<compile_context>
chip_gen: v7x
topology: tpu7x:2x2x1
jax: 0.10.0
libtpu: 0.0.40
codegen_flags: <defaults>
</compile_context>

<pallas_src>
import jax
import jax.numpy as jnp
from jax.experimental import pallas as pl
from jax.experimental.pallas import tpu as pltpu


def _round_up(x: int, m: int) -> int:
    return ((x + m - 1) // m) * m


def _choose_tile(dim: int, max_tile: int, gran: int):
    """Pick (tile, padded_dim): tile % gran == 0, padded_dim % tile == 0,
    tile <= max(max_tile, gran), and padding waste < gran per block."""
    d = _round_up(dim, gran)
    max_tile = max((max_tile // gran) * gran, gran)
    if d <= max_tile:
        return d, d
    nb = -(-d // max_tile)                 # number of blocks
    tile = _round_up(-(-d // nb), gran)    # balanced block size
    return tile, tile * nb


def _num_tensorcores() -> int:
    try:
        return max(int(getattr(jax.devices()[0], "num_cores", 1)), 1)
    except Exception:
        return 1


def _vmem_cap_bytes() -> int:
    try:
        cap = int(pltpu.get_tpu_info().vmem_capacity_bytes)
    except Exception:
        cap = 64 * 1024 * 1024  # conservative (v7x per-TC) fallback
    return int(0.7 * cap)


def _estimate_vmem_bytes(tm: int, tn: int, tk: int) -> int:
    # double-buffered inputs + (up to) double-buffered resident f32 output
    return (2 * (tm * tk + tk * tn) + 2 * tm * tn) * 4


def _matmul_kernel(w_ref, x_ref, o_ref):
    # Output block is resident across the K axis (out index_map ignores k),
    # so accumulate directly into o_ref; zero it at the start of the
    # reduction.
    @pl.when(pl.program_id(2) == 0)
    def _init():
        o_ref[...] = jnp.zeros_like(o_ref)

    o_ref[...] += jnp.dot(
        w_ref[...], x_ref[...], preferred_element_type=jnp.float32
    )


def matrix_forward(weight: jax.Array, x: jax.Array, *,
                   tm: int = 512, tn: int = 512, tk: int = 1024,
                   force_pallas: bool = False) -> jax.Array:
    """Pallas equivalent of Matrix.forward: weight @ x, tiled for TPU."""
    M, K = weight.shape
    K2, N = x.shape
    assert K == K2, f"contraction mismatch: {K} vs {K2}"

    weight = weight.astype(jnp.float32)
    x = x.astype(jnp.float32)

    # Tiny problems: pallas_call launch + padding overhead dwarfs the matmul.
    if not force_pallas and 2 * M * K * N < (1 << 21):
        return jnp.dot(weight, x, preferred_element_type=jnp.float32)

    # Shrink tile *requests* if they would not fit the generation's VMEM.
    cap = _vmem_cap_bytes()
    while _estimate_vmem_bytes(tm, tn, tk) > cap:
        if tk >= max(tm, tn) and tk > 128:
            tk //= 2
        elif tn >= tm and tn > 128:
            tn //= 2
        elif tm > 8:
            tm //= 2
        else:
            break

    # Tiles divide the (8,128)-granular padded dims -> minimal padding waste.
    tm, Mp = _choose_tile(M, tm, 8)      # sublane dim of weight / out
    tk, Kp = _choose_tile(K, tk, 128)    # lane of weight, sublane of x
    tn, Np = _choose_tile(N, tn, 128)    # lane of x / out (lane-dense stores)

    # v7x megacore: if the M/N grid collapsed to a single block, split one
    # parallel axis so both TensorCores get work. No-op on 1-core chips.
    if (Mp // tm) * (Np // tn) == 1 and _num_tensorcores() > 1:
        if Np % 256 == 0:
            tn = Np // 2
        elif Mp % 16 == 0:
            tm = Mp // 2

    # Zero-pad (reduction over zero-padded K is exact); skip when aligned.
    w_p = weight if (Mp, Kp) == (M, K) else jnp.pad(
        weight, ((0, Mp - M), (0, Kp - K)))
    x_p = x if (Kp, Np) == (K, N) else jnp.pad(
        x, ((0, Kp - K), (0, Np - N)))

    grid = (Mp // tm, Np // tn, Kp // tk)

    vmem_limit = int(min(cap,
                         max(2 * _estimate_vmem_bytes(tm, tn, tk),
                             32 * 1024 * 1024)))

    out_p = pl.pallas_call(
        _matmul_kernel,
        out_shape=jax.ShapeDtypeStruct((Mp, Np), jnp.float32),
        grid_spec=pltpu.PrefetchScalarGridSpec(
            num_scalar_prefetch=0,
            grid=grid,
            in_specs=[
                pl.BlockSpec((tm, tk), lambda i, j, k: (i, k)),
                pl.BlockSpec((tk, tn), lambda i, j, k: (k, j)),
            ],
            out_specs=pl.BlockSpec((tm, tn), lambda i, j, k: (i, j)),
        ),
        compiler_params=pltpu.CompilerParams(
            dimension_semantics=("parallel", "parallel", "arbitrary"),
            vmem_limit_bytes=vmem_limit,
        ),
    )(w_p, x_p)

    return out_p if (Mp, Np) == (M, N) else out_p[:M, :N]


if __name__ == "__main__":
    key = jax.random.PRNGKey(0)
    k_w, k_x, k_w2, k_x2 = jax.random.split(key, 4)

    # Small shape implied by the module usage: hidden=32, seq=8.
    # force_pallas=True so the Pallas kernel itself is exercised here.
    M, K, N = 32, 32, 8
    weight = jax.random.normal(k_w, (M, K), dtype=jnp.float32)
    x = jax.random.normal(k_x, (K, N), dtype=jnp.float32)

    out = jax.block_until_ready(matrix_forward(weight, x, force_pallas=True))
    ref = weight @ x
    assert out.shape == (M, N)
    assert jnp.allclose(out, ref, atol=1e-5, rtol=1e-5)

    # Larger, non-tile-aligned shape: multi-block M, multi-step K reduction,
    # and edge padding on every dimension.
    M2, K2, N2 = 600, 2000, 260
    weight2 = jax.random.normal(k_w2, (M2, K2), dtype=jnp.float32)
    x2 = jax.random.normal(k_x2, (K2, N2), dtype=jnp.float32)
    out2 = jax.block_until_ready(matrix_forward(weight2, x2))
    ref2 = weight2 @ x2
    assert out2.shape == (M2, N2)
    assert jnp.allclose(out2, ref2, atol=5e-2, rtol=5e-3)

    print("KERNEL_OK")
</pallas_src>

<mosaic_0001>
module attributes {stable_mosaic.version = 11 : i64} {
  func.func @_matmul_kernel(%arg0: i32, %arg1: i32, %arg2: i32, %arg3: memref<32x128xf32, #tpu.memory_space<vmem>>, %arg4: memref<128x128xf32, #tpu.memory_space<vmem>>, %arg5: memref<32x128xf32, #tpu.memory_space<vmem>>) attributes {dimension_semantics = [#tpu.dimension_semantics<parallel>, #tpu.dimension_semantics<parallel>, #tpu.dimension_semantics<arbitrary>], iteration_bounds = array<i64: 1, 1, 1>, scalar_prefetch = 0 : i64, scratch_operands = 0 : i64, tpu.core_type = #tpu.core_type<tc>, window_params = [{transform_indices = @transform_0, window_bounds = array<i64: 32, 128>}, {transform_indices = @transform_1, window_bounds = array<i64: 128, 128>}, {transform_indices = @transform_2, window_bounds = array<i64: 32, 128>}]} {
    %c0_i32 = arith.constant 0 : i32
    %0 = arith.cmpi eq, %arg2, %c0_i32 : i32
    %1 = arith.extui %0 : i1 to i32
    %c0_i32_0 = arith.constant 0 : i32
    %2 = arith.cmpi ne, %1, %c0_i32_0 : i32
    scf.if %2 {
      %cst_8 = arith.constant 0.000000e+00 : f32
      %9 = vector.broadcast %cst_8 : f32 to vector<32x128xf32>
      %c0_9 = arith.constant 0 : index
      %c0_10 = arith.constant 0 : index
      %10 = vector.load %arg5[%c0_9, %c0_10] : memref<32x128xf32, #tpu.memory_space<vmem>>, vector<32x128xf32>
      tpu.vector_store %arg5[%c0_9, %c0_10], %9 {strides = array<i32>} : memref<32x128xf32, #tpu.memory_space<vmem>>, vector<32x128xf32>,
    } else {
    }
    %c0 = arith.constant 0 : index
    %c0_1 = arith.constant 0 : index
    %3 = vector.load %arg5[%c0, %c0_1] : memref<32x128xf32, #tpu.memory_space<vmem>>, vector<32x128xf32>
    %c0_2 = arith.constant 0 : index
    %c0_3 = arith.constant 0 : index
    %4 = vector.load %arg3[%c0_2, %c0_3] : memref<32x128xf32, #tpu.memory_space<vmem>>, vector<32x128xf32>
    %c0_4 = arith.constant 0 : index
    %c0_5 = arith.constant 0 : index
    %5 = vector.load %arg4[%c0_4, %c0_5] : memref<128x128xf32, #tpu.memory_space<vmem>>, vector<128x128xf32>
    %cst = arith.constant dense<0.000000e+00> : vector<32x128xf32>
    %6 = tpu.matmul %4, %5, %cst {dimension_numbers = #tpu.dot_dimension_numbers<[1], [0], [0], [1], [0, 0, 1, 1], [], []>} : vector<32x128xf32>, vector<128x128xf32>, vector<32x128xf32> -> vector<32x128xf32>
    %7 = arith.addf %3, %6 : vector<32x128xf32>
    %c0_6 = arith.constant 0 : index
    %c0_7 = arith.constant 0 : index
    %8 = vector.load %arg5[%c0_6, %c0_7] : memref<32x128xf32, #tpu.memory_space<vmem>>, vector<32x128xf32>
    tpu.vector_store %arg5[%c0_6, %c0_7], %7 {strides = array<i32>} : memref<32x128xf32, #tpu.memory_space<vmem>>, vector<32x128xf32>,
    return
  }
  func.func @transform_0(%arg0: i32, %arg1: i32, %arg2: i32) -> (i32, i32) {
    %c0_i32 = arith.constant 0 : i32
    return %arg0, %arg2 : i32, i32
  }
  func.func @transform_1(%arg0: i32, %arg1: i32, %arg2: i32) -> (i32, i32) {
    %c0_i32 = arith.constant 0 : i32
    return %arg2, %arg1 : i32, i32
  }
  func.func @transform_2(%arg0: i32, %arg1: i32, %arg2: i32) -> (i32, i32) {
    %c0_i32 = arith.constant 0 : i32
    return %arg0, %arg1 : i32, i32
  }
}

</mosaic_0001>

<bundles_post_ra>
// kernel: tpu_custom_call.1
= control target key start
LH: loop header
LB: loop body
LE: loop exit
PB: predicated region body
PF: predicated region fallthrough
CT: control target
= control target key end

     0   :  { %7 = vsyncpa [#allocation3], 0  ;;  %s432_s0 = inlined_call_operand.hbm [shape: f32[32,128], index: 0, kind: input, shape index: {}]   ;;  %s433_s1 = inlined_call_operand.hbm [shape: f32[128,128], index: 1, kind: input, shape index: {}]   ;;  %s434_s2 = inlined_call_operand.hbm [shape: f32[32,128], index: 2, kind: output, shape index: {}]  }
   0x1   :  { %8 = vsyncpa [#allocation6], 0 }
   0x2   :  { %9 = vsyncpa [#allocation4], 0  ;;  %s367_s9 = smov [#allocation2]   ;;  %s295_s13 = scalar_lea.hbm %s432_s0, 512 }
   0x3   :  { %s15_s10 = sshll.u32 %s367_s9, 4  ;;  %p296_p0 = scmp.ne.s32.totalorder %s432_s0, %s295_s13  ;;  %s16_s10 = int_to_ptr.vmem [resolvable:$true] %s15_s10 }
   0x4   :  { %p299_p1 = scmp.lt.u32.totalorder %s295_s13, %s432_s0 }
   0x6   :  { %p301_p2 = pnand %p299_p1, %p296_p0 }
   0x8   :  { %304 = shalt.err (!%p301_p2)
}
   0x9   :  { %s305_s18 = scalar_lea.vmem %s16_s10, 512  ;;  %p310_p4 = scmp.lt.s32.totalorder %s16_s10, %s16_s10 }
   0xa   :  { %p306_p3 = scmp.ne.s32.totalorder %s16_s10, %s305_s18  ;;  %p311_p5 = scmp.lt.s32.totalorder %s305_s18, %s305_s18 }
   0xc   :  { %p312_p6 = por %p311_p5, %p310_p4 }
   0xe   :  { %p313_p7 = pnand %p312_p6, %p306_p3 }
  0x10   :  { %316 = shalt.err (!%p313_p7)
}
  0x11   :  { %s368_s19 = smov 128   ;;  %s369_s20 = smov 8  }
  0x12   :  { %21 = dma.hbm_to_vmem [thread:$0]  %s432_s0, 512, %s16_s10, [#allocation3], %s368_s19, %s368_s19, %s369_s20  }
  0x13   :  { %s370_s23 = smov [#allocation5]   ;;  %s317_s27 = scalar_lea.hbm %s433_s1, 2048 }
  0x14   :  { %s27_s24 = sshll.u32 %s370_s23, 4  ;;  %p318_p8 = scmp.ne.s32.totalorder %s433_s1, %s317_s27  ;;  %s28_s24 = int_to_ptr.vmem [resolvable:$true] %s27_s24 }
  0x15   :  { %p321_p9 = scmp.lt.u32.totalorder %s317_s27, %s433_s1 }
  0x17   :  { %p323_p10 = pnand %p321_p9, %p318_p8 }
  0x19   :  { %326 = shalt.err (!%p323_p10)
}
  0x1a   :  { %s327_s4 = scalar_lea.vmem %s28_s24, 2048  ;;  %p332_p12 = scmp.lt.s32.totalorder %s28_s24, %s28_s24 }
  0x1b   :  { %p328_p11 = scmp.ne.s32.totalorder %s28_s24, %s327_s4  ;;  %p333_p13 = scmp.lt.s32.totalorder %s327_s4, %s327_s4 }
  0x1d   :  { %p334_p0 = por %p333_p13, %p332_p12 }
  0x1f   :  { %p335_p1 = pnand %p334_p0, %p328_p11 }
  0x21   :  { %338 = shalt.err (!%p335_p1)
}
  0x22   :  { %33 = dma.hbm_to_vmem [thread:$0]  %s433_s1, 2048, %s28_s24, [#allocation6], %s368_s19, %s368_s19, %s369_s20  }
  0x23   :  { %361 = dma.done.wait [#allocation3], 512  }
  0x24   :  { %362 = vsyncadd [#allocation3], 4294966784 }
  0x25   :  { %363 = dma.done.wait [#allocation6], 2048  }
  0x26   :  { %364 = vsyncadd [#allocation6], 4294965248  ;;  %v56_v0 = vld [vmem:[#allocation5] sm:$0xff]  ;;  %v57_v1 = vld [vmem:[#allocation5 + $0x8] sm:$0xff]  ;;  %s371_s1 = smov [#allocation7]  }
  0x27   :  { %v58_v2 = vld [vmem:[#allocation5 + $0x10] sm:$0xff]  ;;  %v241_v3 = vpack.c.bf16 %v57_v1, %v56_v0  ;;  %v59_v4 = vld [vmem:[#allocation5 + $0x18] sm:$0xff]  ;;  %v60_v6 = vld [vmem:[#allocation5 + $0x20] sm:$0xff]  ;;  %s170_s6 = sshll.u32 %s371_s1, 4  ;;  %s171_s6 = int_to_ptr.vmem [resolvable:$true] %s170_s6 }
  0x28   :  { %v245_v5 = vpack.c.bf16 %v59_v4, %v58_v2  ;;  %v61_v7 = vld [vmem:[#allocation5 + $0x28] sm:$0xff]  ;;  %v52_v9 = vld [vmem:[#allocation2] sm:$0xff]  ;;  %v54_v10 = vld [vmem:[#allocation2 + $0x10] sm:$0xff]  ;;  %s339_s7 = scalar_lea.vmem %s171_s6, 512  ;;  %p344_p3 = scmp.lt.s32.totalorder %s171_s6, %s171_s6 }
  0x29   :  { %242 = vmatprep.subr.bf16.mxu0 %v241_v3  ;;  %273 = vmatprep.subr.bf16.mxu1 %v241_v3  ;;  %v249_v8 = vpack.c.bf16 %v61_v7, %v60_v6  ;;  %v62_v11 = vld [vmem:[#allocation5 + $0x30] sm:$0xff]  ;;  %v63_v12 = vld [vmem:[#allocation5 + $0x38] sm:$0xff]  ;;  %v64_v14 = vld [vmem:[#allocation5 + $0x40] sm:$0xff]  ;;  %p340_p2 = scmp.ne.s32.totalorder %s171_s6, %s339_s7  ;;  %p345_p4 = scmp.lt.s32.totalorder %s339_s7, %s339_s7 }
  0x2a   :  { %244 = vmatpush3.bf16.msra.mxu0 %v241_v3  ;;  %281 = vmatpush3.bf16.msra.mxu1 %v241_v3  ;;  %v253_v13 = vpack.c.bf16 %v63_v12, %v62_v11  ;;  %v65_v15 = vld [vmem:[#allocation5 + $0x48] sm:$0xff]  ;;  %v66_v17 = vld [vmem:[#allocation5 + $0x50] sm:$0xff]  ;;  %v67_v18 = vld [vmem:[#allocation5 + $0x58] sm:$0xff] }
  0x2b   :  { %246 = vmatprep.subr.bf16.mxu0 %v245_v5  ;;  %274 = vmatprep.subr.bf16.mxu1 %v245_v5  ;;  %v257_v16 = vpack.c.bf16 %v65_v15, %v64_v14  ;;  %v261_v19 = vpack.c.bf16 %v67_v18, %v66_v17  ;;  %v68_v20 = vld [vmem:[#allocation5 + $0x60] sm:$0xff]  ;;  %v69_v21 = vld [vmem:[#allocation5 + $0x68] sm:$0xff]  ;;  %v70_v23 = vld [vmem:[#allocation5 + $0x70] sm:$0xff]  ;;  %p346_p5 = por %p345_p4, %p344_p3 }
  0x2c   :  { %235 = vmatprep.mubr.f32.mxu0 %v52_v9  ;;  %238 = vmatprep.mubr.f32.mxu1 %v54_v10  ;;  %v265_v22 = vpack.c.bf16 %v69_v21, %v68_v20  ;;  %v71_v24 = vld [vmem:[#allocation5 + $0x78] sm:$0xff]  ;;  %v53_v26 = vld [vmem:[#allocation2 + $0x8] sm:$0xff] }
  0x2d   :  { %v269_v25 = vpack.c.bf16 %v71_v24, %v70_v23  ;;  %v55_v27 = vld [vmem:[#allocation2 + $0x18] sm:$0xff]  ;;  %p347_p6 = pnand %p346_p5, %p340_p2 }
  0x2e   :  { %248 = vmatpush3.bf16.msra.mxu0 %v245_v5  ;;  %282 = vmatpush3.bf16.msra.mxu1 %v245_v5 }
  0x2f   :  { %250 = vmatprep.subr.bf16.mxu0 %v249_v8  ;;  %275 = vmatprep.subr.bf16.mxu1 %v249_v8 }
  0x32   :  { %252 = vmatpush3.bf16.msra.mxu0 %v249_v8  ;;  %283 = vmatpush3.bf16.msra.mxu1 %v249_v8 }
  0x33   :  { %254 = vmatprep.subr.bf16.mxu0 %v253_v13  ;;  %276 = vmatprep.subr.bf16.mxu1 %v253_v13 }
  0x36   :  { %256 = vmatpush3.bf16.msra.mxu0 %v253_v13  ;;  %284 = vmatpush3.bf16.msra.mxu1 %v253_v13 }
  0x37   :  { %258 = vmatprep.subr.bf16.mxu0 %v257_v16  ;;  %277 = vmatprep.subr.bf16.mxu1 %v257_v16 }
  0x3a   :  { %260 = vmatpush3.bf16.msra.mxu0 %v257_v16  ;;  %285 = vmatpush3.bf16.msra.mxu1 %v257_v16 }
  0x3b   :  { %262 = vmatprep.subr.bf16.mxu0 %v261_v19  ;;  %278 = vmatprep.subr.bf16.mxu1 %v261_v19 }
  0x3e   :  { %264 = vmatpush3.bf16.msra.mxu0 %v261_v19  ;;  %286 = vmatpush3.bf16.msra.mxu1 %v261_v19 }
  0x3f   :  { %266 = vmatprep.subr.bf16.mxu0 %v265_v22  ;;  %279 = vmatprep.subr.bf16.mxu1 %v265_v22 }
  0x42   :  { %268 = vmatpush3.bf16.msra.mxu0 %v265_v22  ;;  %287 = vmatpush3.bf16.msra.mxu1 %v265_v22 }
  0x43   :  { %270 = vmatprep.subr.bf16.mxu0 %v269_v25  ;;  %280 = vmatprep.subr.bf16.mxu1 %v269_v25 }
  0x46   :  { %272 = vmatpush3.bf16.msra.mxu0 %v269_v25  ;;  %288 = vmatpush3.bf16.msra.mxu1 %v269_v25 }
  0x49   :  { %236 = vmatmul.mubr.f32.vlgmr.msra.gmra.mrb[0].mxu0 %v53_v26  ;;  %239 = vmatmul.mubr.f32.vlgmr.msra.gmra.mrb[0].mxu1 %v55_v27 }
 0x11c   :  { %v237_v28 = vpop.f32.mrb[0].mxu0  ;;  %v240_v29 = vpop.f32.mrb[0].mxu1 }
 0x11d   :  { %v138_v30 = vpop.f32.mrb[1].mxu0  ;;  %v148_v31 = vpop.f32.mrb[1].mxu1  ;;  %162 = vst [vmem:[#allocation7 + $0x8] sm:$0xff] %v237_v28  ;;  %164 = vst [vmem:[#allocation7 + $0x18] sm:$0xff] %v240_v29 }
 0x11e   :  { %161 = vst [vmem:[#allocation7] sm:$0xff] %v138_v30  ;;  %163 = vst [vmem:[#allocation7 + $0x10] sm:$0xff] %v148_v31 }
 0x11f   :  { %350 = shalt.err (!%p347_p6)
}
 0x120   :  { %s351_s10 = scalar_lea.hbm %s434_s2, 512 }
 0x121   :  { %p352_p7 = scmp.ne.s32.totalorder %s434_s2, %s351_s10  ;;  %p355_p8 = scmp.lt.u32.totalorder %s351_s10, %s434_s2 }
 0x123   :  { %p357_p9 = pnand %p355_p8, %p352_p7 }
 0x125   :  { %360 = shalt.err (!%p357_p9)
}
 0x126   :  { %176 = dma.vmem_to_hbm [thread:$0]  %s171_s6, 512, %s434_s2, [#allocation4], %s368_s19, %s368_s19, %s369_s20  }
 0x127   :  { %365 = dma.done.wait [#allocation4], 512  }
 0x128   :  { %366 = vsyncadd [#allocation4], 4294966784 }
 0x129   :  { %180 = vsyncpa [#allocation3], 1 }
 0x12a   :  { %181 = vsyncpa [#allocation6], 1 }
 0x12b   :  { %182 = vsyncpa [#allocation4], 1 }

</bundles_post_ra>
